<compile_context>
chip_gen: v5e
topology: v5e:2x2
jax: 0.10.0
libtpu: 0.0.40
codegen_flags: <defaults>
</compile_context>

<pallas_src>
import jax
import jax.numpy as jnp
from jax.experimental import pallas as pl
from jax.experimental.pallas import tpu as pltpu

_LANE = 128
# ~2 MiB per x-tile: measured tiled f32 adds hit ~85%+ of HBM roofline around
# 1-2 MiB tiles; with x + out double-buffered plus the resident pos row this
# stays comfortably inside the default scoped VMEM on v5e/v6e/v7x.
_TARGET_TILE_BYTES = 2 * 1024 * 1024


def _add_pos_emb_kernel(pos_ref, x_ref, o_ref):
    # pos_ref: (1, Lp) block, constant index map -> fetched once, kept resident.
    # x_ref / o_ref: (TB, Lp) blocks; single full-tile unmasked store.
    o_ref[...] = x_ref[...] + pos_ref[...]


def _round_up(a: int, b: int) -> int:
    return (a + b - 1) // b * b


def positional_embedding(x: jax.Array, pos_emb: jax.Array) -> jax.Array:
    """Pallas implementation of `pos_emb + x` (pos_emb broadcast over batch).

    x:       [B, S, E]
    pos_emb: [1, S, E]
    returns: [B, S, E]
    """
    B, S, E = x.shape
    assert pos_emb.shape == (1, S, E)
    dtype = x.dtype
    itemsize = jnp.dtype(dtype).itemsize

    # Flatten (S, E) into one lane axis: the add becomes a row-broadcast and the
    # last block dim can be made a large multiple of 128 (lane-dense stores).
    L = S * E
    Lp = _round_up(L, _LANE)
    x2 = x.reshape(B, L)
    p2 = pos_emb.reshape(1, L)
    if Lp != L:
        # Layout plumbing only: pad lane axis so stores are unmasked full vregs.
        x2 = jnp.pad(x2, ((0, 0), (0, Lp - L)))
        p2 = jnp.pad(p2, ((0, 0), (0, Lp - L)))

    # Rows (batch elements) per grid step: big enough to move a few MiB per
    # step, a multiple of the sublane packing for this dtype, capped at B.
    sublane = max(8, (32 // (8 * itemsize)) * 8)  # 8 for f32, 16 for bf16, 32 for int8
    row_bytes = Lp * itemsize
    tb = max(1, _TARGET_TILE_BYTES // row_bytes)
    tb = max(sublane, (tb // sublane) * sublane)
    if tb >= B:
        tb = B  # single block over the batch (full-extent dim is always legal)
    grid = (pl.cdiv(B, tb),)  # partial edge block (if any) is masked by the pipeline

    out2 = pl.pallas_call(
        _add_pos_emb_kernel,
        out_shape=jax.ShapeDtypeStruct((B, Lp), dtype),
        grid_spec=pltpu.PrefetchScalarGridSpec(
            num_scalar_prefetch=0,
            grid=grid,
            in_specs=[
                # pos row: constant block index -> DMA'd once, stays resident.
                pl.BlockSpec((1, Lp), lambda i: (0, 0)),
                # x: TB batch rows per grid step.
                pl.BlockSpec((tb, Lp), lambda i: (i, 0)),
            ],
            out_specs=pl.BlockSpec((tb, Lp), lambda i: (i, 0)),
        ),
        compiler_params=pltpu.CompilerParams(
            # Batch tiles are independent -> shard across TensorCores (v7x megacore).
            dimension_semantics=("parallel",),
        ),
    )(p2, x2)

    if Lp != L:
        out2 = out2[:, :L]
    return out2.reshape(B, S, E)


if __name__ == "__main__":
    # Module config: channels=4, emb_size=32  ->  pos_emb shape (1, 5, 32)
    channels = 4
    emb_size = 32
    batch = 2
    S = channels + 1

    key = jax.random.PRNGKey(0)
    k_pos, k_x = jax.random.split(key)

    # Deterministic "parameter" init (stand-in for torch.randn in __init__).
    pos_emb = jax.random.normal(k_pos, (1, S, emb_size), dtype=jnp.float32)
    x = jax.random.normal(k_x, (batch, S, emb_size), dtype=jnp.float32)

    out = positional_embedding(x, pos_emb)
    out = jax.block_until_ready(out)

    # Correctness check against plain-JAX reference (same semantics as PyTorch).
    ref = pos_emb + x
    assert out.shape == (batch, S, emb_size)
    assert out.dtype == x.dtype
    assert jnp.allclose(out, ref, atol=1e-6, rtol=1e-6)

    print("KERNEL_OK")
</pallas_src>

<mosaic_0001>
module attributes {stable_mosaic.version = 11 : i64} {
  func.func @_add_pos_emb_kernel(%arg0: i32, %arg1: memref<1x256xf32, #tpu.memory_space<vmem>>, %arg2: memref<2x256xf32, #tpu.memory_space<vmem>>, %arg3: memref<2x256xf32, #tpu.memory_space<vmem>>) attributes {dimension_semantics = [#tpu.dimension_semantics<parallel>], iteration_bounds = array<i64: 1>, scalar_prefetch = 0 : i64, scratch_operands = 0 : i64, tpu.core_type = #tpu.core_type<tc>, window_params = [{pipeline_mode = #tpu.pipeline_mode<synchronous>, transform_indices = @transform_0, window_bounds = array<i64: 1, 256>}, {transform_indices = @transform_1, window_bounds = array<i64: 2, 256>}, {transform_indices = @transform_2, window_bounds = array<i64: 2, 256>}]} {
    %c0 = arith.constant 0 : index
    %c0_0 = arith.constant 0 : index
    %0 = vector.load %arg2[%c0, %c0_0] : memref<2x256xf32, #tpu.memory_space<vmem>>, vector<2x256xf32>
    %c0_1 = arith.constant 0 : index
    %c0_2 = arith.constant 0 : index
    %1 = vector.load %arg1[%c0_1, %c0_2] : memref<1x256xf32, #tpu.memory_space<vmem>>, vector<1x256xf32>
    %2 = vector.broadcast %1 : vector<1x256xf32> to vector<2x256xf32>
    %3 = arith.addf %0, %2 : vector<2x256xf32>
    %c0_3 = arith.constant 0 : index
    %c0_4 = arith.constant 0 : index
    %4 = vector.load %arg3[%c0_3, %c0_4] : memref<2x256xf32, #tpu.memory_space<vmem>>, vector<2x256xf32>
    tpu.vector_store %arg3[%c0_3, %c0_4], %3 {strides = array<i32>} : memref<2x256xf32, #tpu.memory_space<vmem>>, vector<2x256xf32>,
    return
  }
  func.func @transform_0(%arg0: i32) -> (i32, i32) {
    %c0_i32 = arith.constant 0 : i32
    %c0_i32_0 = arith.constant 0 : i32
    %c0_i32_1 = arith.constant 0 : i32
    return %c0_i32, %c0_i32_0 : i32, i32
  }
  func.func @transform_1(%arg0: i32) -> (i32, i32) {
    %c0_i32 = arith.constant 0 : i32
    %c0_i32_0 = arith.constant 0 : i32
    return %arg0, %c0_i32 : i32, i32
  }
  func.func @transform_2(%arg0: i32) -> (i32, i32) {
    %c0_i32 = arith.constant 0 : i32
    %c0_i32_0 = arith.constant 0 : i32
    return %arg0, %c0_i32 : i32, i32
  }
}

</mosaic_0001>

<bundles_post_ra>
// kernel: tpu_custom_call.1
= control target key start
LH: loop header
LB: loop body
LE: loop exit
PB: predicated region body
PF: predicated region fallthrough
CT: control target
= control target key end

     0   :  { %7 = vsyncpa [#allocation3], 0  ;;  %s177_s0 = inlined_call_operand.hbm [shape: f32[1,256], index: 0, kind: input, shape index: {}]   ;;  %s178_s1 = inlined_call_operand.hbm [shape: f32[2,256], index: 1, kind: input, shape index: {}]   ;;  %s179_s2 = inlined_call_operand.hbm [shape: f32[2,256], index: 2, kind: output, shape index: {}]  }
   0x1   :  { %8 = vsyncpa [#allocation6], 0 }
   0x2   :  { %9 = vsyncpa [#allocation4], 0  ;;  %s15_s11 = sshll.u32 %s177_s0, 4  ;;  %s150_s12 = smov [#allocation2]   ;;  %s16_s11 = int_to_ptr.hbm [resolvable:$true] %s15_s11 }
   0x3   :  { %s17_s13 = sshll.u32 %s150_s12, 4  ;;  %s26_s16 = sshll.u32 %s178_s1, 4  ;;  %s18_s13 = int_to_ptr.vmem [resolvable:$true] %s17_s13  ;;  %s27_s16 = int_to_ptr.hbm [resolvable:$true] %s26_s16 }
   0x4   :  { %20 = dma.hbm_to_vmem [thread:$0]  %s16_s11, 32, %s18_s13, [#allocation3]  }
   0x5   :  { %s151_s17 = smov [#allocation5]  }
   0x6   :  { %s28_s18 = sshll.u32 %s151_s17, 4  ;;  %s29_s18 = int_to_ptr.vmem [resolvable:$true] %s28_s18 }
   0x7   :  { %31 = dma.hbm_to_vmem [thread:$0]  %s27_s16, 64, %s29_s18, [#allocation6]  }
   0x8   :  { %144 = dma.done.wait [#allocation3], 32  }
   0x9   :  { %145 = vsyncadd [#allocation3], 4294967264 }
   0xa   :  { %146 = dma.done.wait [#allocation6], 64  }
   0xb   :  { %147 = vsyncadd [#allocation6], 4294967232  ;;  %v41_v0 = vld [vmem:[#allocation2] sm:$0x3]  ;;  %vm46_vm0 = vcmask 1041408   ;;  %s152_s0 = smov [#allocation7]  }
   0xc   :  { %v43_v1 = vperm.slane %v41_v0, 0  ;;  %v44_v2 = vperm.slane %v41_v0, 1  ;;  %v40_v3 = vld [vmem:[#allocation5] sm:$0xf]  ;;  %s56_s19 = sshll.u32 %s152_s0, 4  ;;  %s58_s21 = sshll.u32 %s179_s2, 4  ;;  %s57_s19 = int_to_ptr.vmem [resolvable:$true] %s56_s19  ;;  %s59_s21 = int_to_ptr.hbm [resolvable:$true] %s58_s21 }
   0xe   :  { %v45_v4 = vrot.slane %v44_v2, 6 }
  0x10   :  { %v47_v5 = vsel %vm46_vm0, %v43_v1, %v45_v4 }
  0x11   :  { %v49_v6 = vadd.f32 %v47_v5, %v40_v3 }
  0x13   :  { %50 = vst [vmem:[#allocation7] sm:$0xf] %v49_v6 }
  0x14   :  { %61 = dma.vmem_to_hbm [thread:$0]  %s57_s19, 64, %s59_s21, [#allocation4]  }
  0x15   :  { %148 = dma.done.wait [#allocation4], 64  }
  0x16   :  { %149 = vsyncadd [#allocation4], 4294967232 }
  0x17   :  { %66 = vsyncpa [#allocation3], 1 }
  0x18   :  { %67 = vsyncpa [#allocation6], 1 }
  0x19   :  { %68 = vsyncpa [#allocation4], 1 }

</bundles_post_ra>
